<compile_context>
chip_gen: v7x
topology: tpu7x:2x2x1
jax: 0.10.0
libtpu: 0.0.40
codegen_flags: <defaults>
</compile_context>

<pallas_src>
import math
import functools

import jax
import jax.numpy as jnp
from jax.experimental import pallas as pl
from jax.experimental.pallas import tpu as pltpu


def _attention_kernel(hs_ref, wqkv_ref, bqkv_ref, wo_ref, bo_ref,
                      ln_g_ref, ln_b_ref, bias_ref, coef_ref, mask_ref, out_ref,
                      *, num_heads, head_dim, eps):
    # One grid step == one batch element; everything fits in VMEM at these sizes.
    hs = hs_ref[0]                        # [S, H]
    S, H = hs.shape
    d = head_dim
    scale = 1.0 / math.sqrt(d)

    # ---- Fused QKV projection: one [S,H] x [H,3H] MXU op (bias added once). ----
    qkv = jnp.dot(hs, wqkv_ref[...], preferred_element_type=jnp.float32) + bqkv_ref[...]

    # transpose_for_scores: build head-major batched tensors [nh, S, d] from the
    # fused projection (static lane slices + leading-axis stack; no matmuls here).
    def split_heads(base):
        return jnp.stack(
            [qkv[:, base + h * d: base + (h + 1) * d] for h in range(num_heads)],
            axis=0)

    q = split_heads(0)          # [nh, S, d]
    k = split_heads(H)          # [nh, S, d]
    v = split_heads(2 * H)      # [nh, S, d]

    # Additive bias (bias_matrix * coef) + attention mask, hoisted: shared by all
    # heads, computed once per grid step.  mask_ref[0] is [1, S] -> broadcasts.
    combined = bias_ref[...] * coef_ref[0, 0] + mask_ref[0]          # [S, S]

    # ---- Batched attention over the head axis (one dot_general per stage). ----
    scores = jnp.einsum('hqd,hkd->hqk', q, k,
                        preferred_element_type=jnp.float32) * scale   # [nh, S, S]
    scores = scores + combined[None]

    # Numerically-stable softmax along the key axis.
    m = jnp.max(scores, axis=-1, keepdims=True)
    e = jnp.exp(scores - m)
    probs = e * pl.reciprocal(jnp.sum(e, axis=-1, keepdims=True), approx=False)
    # TODO(synk): attention-probs dropout / head_mask omitted (eval-mode identity, no head_mask).

    ctx = jnp.einsum('hqk,hkd->hqd', probs, v,
                     preferred_element_type=jnp.float32)              # [nh, S, d]

    # Output projection directly from head-major context:
    #   attn_out = sum_h ctx[h] @ Wo[h*d:(h+1)*d, :]
    # (wo_ref is pre-reshaped to [nh, d, H] in the wrapper, so no lane-axis
    #  concat or transpose-back is needed inside the kernel.)
    attn_out = jnp.einsum('hqd,hdo->hqo', ctx, wo_ref[...],
                          preferred_element_type=jnp.float32).sum(axis=0)
    attn_out = attn_out + bo_ref[...]

    # Residual + LayerNorm (output dropout is identity in eval mode).
    x = attn_out + hs
    mu = jnp.mean(x, axis=-1, keepdims=True)
    var = jnp.mean((x - mu) ** 2, axis=-1, keepdims=True)
    y = (x - mu) * jax.lax.rsqrt(var + eps)
    y = y * ln_g_ref[...] + ln_b_ref[...]
    out_ref[0] = y.astype(out_ref.dtype)


def custom_bert_attention(hidden_states, params, bias_matrix_chunk, bias_coef,
                          attention_mask, *, num_heads, eps=1e-12):
    """attention_mask: additive key mask of shape [B, 1, S]."""
    B, S, H = hidden_states.shape
    d = H // num_heads

    # Fuse Q/K/V weights & biases in the wrapper (free, outside the kernel).
    wqkv = jnp.concatenate([params["wq"], params["wk"], params["wv"]], axis=1)  # [H, 3H]
    bqkv = jnp.concatenate([params["bq"], params["bk"], params["bv"]], axis=1)  # [1, 3H]
    # Head-major output weight: [H, H] -> [nh, d, H].
    wo3 = params["wo"].reshape(num_heads, d, H)
    coef = jnp.asarray(bias_coef, jnp.float32).reshape(1, 1)

    kernel = functools.partial(_attention_kernel,
                               num_heads=num_heads, head_dim=d, eps=eps)
    full = lambda shape: pl.BlockSpec(shape, lambda b, _s=len(shape): (0,) * _s)

    return pl.pallas_call(
        kernel,
        out_shape=jax.ShapeDtypeStruct((B, S, H), hidden_states.dtype),
        grid=(B,),
        in_specs=[
            pl.BlockSpec((1, S, H), lambda b: (b, 0, 0)),        # hidden_states
            full((H, 3 * H)), full((1, 3 * H)),                  # fused Wqkv, bqkv
            full((num_heads, d, H)), full((1, H)),               # Wo (head-major), bo
            full((1, H)), full((1, H)),                          # LN gamma, beta
            full((S, S)),                                        # bias_matrix_chunk
            pl.BlockSpec(memory_space=pltpu.MemorySpace.SMEM),   # bias_coef scalar
            pl.BlockSpec((1, 1, S), lambda b: (b, 0, 0)),        # additive key mask [B,1,S]
        ],
        out_specs=pl.BlockSpec((1, S, H), lambda b: (b, 0, 0)),
        # One batch per grid step: maps batches across the two TCs on v7x; on
        # single-TC v5e/v6e the serial loop overhead is negligible here.
        compiler_params=pltpu.CompilerParams(dimension_semantics=("parallel",)),
    )(hidden_states, wqkv, bqkv, wo3, params["bo"],
      params["ln_g"], params["ln_b"], bias_matrix_chunk, coef, attention_mask)


def reference(hidden_states, params, bias_matrix_chunk, bias_coef,
              attention_mask, *, num_heads, eps=1e-12):
    B, S, H = hidden_states.shape
    d = H // num_heads

    def proj(x, w, b):
        return x @ w + b  # w already [in, out]

    def split_heads(x):  # [B,S,H] -> [B,nh,S,d]
        return x.reshape(B, S, num_heads, d).transpose(0, 2, 1, 3)

    q = split_heads(proj(hidden_states, params["wq"], params["bq"]))
    k = split_heads(proj(hidden_states, params["wk"], params["bk"]))
    v = split_heads(proj(hidden_states, params["wv"], params["bv"]))

    scores = jnp.einsum("bhqd,bhkd->bhqk", q, k) / math.sqrt(d)
    scores = scores + (bias_matrix_chunk[None, None] * bias_coef)
    scores = scores + attention_mask[:, None]           # [B,1,S] -> [B,1,1,S]
    probs = jax.nn.softmax(scores, axis=-1)
    ctx = jnp.einsum("bhqk,bhkd->bhqd", probs, v).transpose(0, 2, 1, 3).reshape(B, S, H)

    out = ctx @ params["wo"] + params["bo"]
    x = out + hidden_states
    mu = x.mean(-1, keepdims=True)
    var = ((x - mu) ** 2).mean(-1, keepdims=True)
    return (x - mu) / jnp.sqrt(var + eps) * params["ln_g"] + params["ln_b"]


if __name__ == "__main__":
    B, S, H, NH = 2, 8, 32, 4   # batch, seq, hidden, num_heads (head_dim = 8)

    key = jax.random.PRNGKey(0)
    ks = jax.random.split(key, 12)
    init = lambda k, shape, s=0.05: (s * jax.random.normal(k, shape)).astype(jnp.float32)

    params = {
        "wq": init(ks[0], (H, H)), "bq": init(ks[1], (1, H)),
        "wk": init(ks[2], (H, H)), "bk": init(ks[3], (1, H)),
        "wv": init(ks[4], (H, H)), "bv": init(ks[5], (1, H)),
        "wo": init(ks[6], (H, H)), "bo": init(ks[7], (1, H)),
        "ln_g": jnp.ones((1, H), jnp.float32),
        "ln_b": jnp.zeros((1, H), jnp.float32),
    }

    hidden_states = init(ks[8], (B, S, H), s=1.0)
    bias_matrix_chunk = init(ks[9], (S, S), s=0.5)
    bias_coef = jnp.float32(0.3)

    # Additive key mask (last two key positions of batch 1 masked out), [B, 1, S].
    pad = jnp.zeros((B, S), jnp.float32).at[1, -2:].set(-10000.0)
    attention_mask = pad[:, None, :]

    out = custom_bert_attention(hidden_states, params, bias_matrix_chunk, bias_coef,
                                attention_mask, num_heads=NH)
    out = jax.block_until_ready(out)

    ref = reference(hidden_states, params, bias_matrix_chunk, bias_coef,
                    attention_mask, num_heads=NH)
    assert out.shape == (B, S, H)
    assert jnp.allclose(out, ref, atol=1e-4, rtol=1e-4), "mismatch vs JAX reference"
    print("KERNEL_OK")
</pallas_src>

<mosaic_0001>
module attributes {stable_mosaic.version = 11 : i64} {
  func.func @_attention_kernel(%arg0: i32, %arg1: memref<1x8x32xf32, #tpu.memory_space<vmem>>, %arg2: memref<32x96xf32, #tpu.memory_space<vmem>>, %arg3: memref<1x96xf32, #tpu.memory_space<vmem>>, %arg4: memref<4x8x32xf32, #tpu.memory_space<vmem>>, %arg5: memref<1x32xf32, #tpu.memory_space<vmem>>, %arg6: memref<1x32xf32, #tpu.memory_space<vmem>>, %arg7: memref<1x32xf32, #tpu.memory_space<vmem>>, %arg8: memref<8x8xf32, #tpu.memory_space<vmem>>, %arg9: memref<1x1xf32, #tpu.memory_space<smem>>, %arg10: memref<1x1x8xf32, #tpu.memory_space<vmem>>, %arg11: memref<1x8x32xf32, #tpu.memory_space<vmem>>) attributes {dimension_semantics = [#tpu.dimension_semantics<parallel>], iteration_bounds = array<i64: 2>, scalar_prefetch = 0 : i64, scratch_operands = 0 : i64, tpu.core_type = #tpu.core_type<tc>, window_params = [{transform_indices = @transform_0, window_bounds = array<i64: 1, 8, 32>}, {pipeline_mode = #tpu.pipeline_mode<synchronous>, transform_indices = @transform_1, window_bounds = array<i64: 32, 96>}, {pipeline_mode = #tpu.pipeline_mode<synchronous>, transform_indices = @transform_2, window_bounds = array<i64: 1, 96>}, {pipeline_mode = #tpu.pipeline_mode<synchronous>, transform_indices = @transform_3, window_bounds = array<i64: 4, 8, 32>}, {pipeline_mode = #tpu.pipeline_mode<synchronous>, transform_indices = @transform_4, window_bounds = array<i64: 1, 32>}, {pipeline_mode = #tpu.pipeline_mode<synchronous>, transform_indices = @transform_5, window_bounds = array<i64: 1, 32>}, {pipeline_mode = #tpu.pipeline_mode<synchronous>, transform_indices = @transform_6, window_bounds = array<i64: 1, 32>}, {pipeline_mode = #tpu.pipeline_mode<synchronous>, transform_indices = @transform_7, window_bounds = array<i64: 8, 8>}, {transform_indices = @transform_8, window_bounds = array<i64: 1, 1>}, {transform_indices = @transform_9, window_bounds = array<i64: 1, 1, 8>}, {transform_indices = @transform_10, window_bounds = array<i64: 1, 8, 32>}]} {
    %c0 = arith.constant 0 : index
    %c0_0 = arith.constant 0 : index
    %c0_1 = arith.constant 0 : index
    %0 = vector.load %arg1[%c0, %c0_0, %c0_1] : memref<1x8x32xf32, #tpu.memory_space<vmem>>, vector<1x8x32xf32>
    %1 = vector.shape_cast %0 : vector<1x8x32xf32> to vector<8x32xf32>
    %c0_2 = arith.constant 0 : index
    %c0_3 = arith.constant 0 : index
    %2 = vector.load %arg2[%c0_2, %c0_3] : memref<32x96xf32, #tpu.memory_space<vmem>>, vector<32x96xf32>
    %cst = arith.constant dense<0.000000e+00> : vector<8x96xf32>
    %3 = tpu.matmul %1, %2, %cst {dimension_numbers = #tpu.dot_dimension_numbers<[1], [0], [0], [1], [0, 0, 1, 1], [], []>} : vector<8x32xf32>, vector<32x96xf32>, vector<8x96xf32> -> vector<8x96xf32>
    %c0_4 = arith.constant 0 : index
    %c0_5 = arith.constant 0 : index
    %4 = vector.load %arg3[%c0_4, %c0_5] : memref<1x96xf32, #tpu.memory_space<vmem>>, vector<1x96xf32>
    %5 = vector.broadcast %4 : vector<1x96xf32> to vector<8x96xf32>
    %6 = arith.addf %3, %5 : vector<8x96xf32>
    %7 = vector.extract_strided_slice %6 {offsets = [0, 0], sizes = [8, 8], strides = [1, 1]} : vector<8x96xf32> to vector<8x8xf32>
    %8 = vector.extract_strided_slice %6 {offsets = [0, 8], sizes = [8, 8], strides = [1, 1]} : vector<8x96xf32> to vector<8x8xf32>
    %9 = vector.extract_strided_slice %6 {offsets = [0, 16], sizes = [8, 8], strides = [1, 1]} : vector<8x96xf32> to vector<8x8xf32>
    %10 = vector.extract_strided_slice %6 {offsets = [0, 24], sizes = [8, 8], strides = [1, 1]} : vector<8x96xf32> to vector<8x8xf32>
    %11 = vector.shape_cast %7 : vector<8x8xf32> to vector<1x8x8xf32>
    %12 = vector.shape_cast %8 : vector<8x8xf32> to vector<1x8x8xf32>
    %13 = vector.shape_cast %9 : vector<8x8xf32> to vector<1x8x8xf32>
    %14 = vector.shape_cast %10 : vector<8x8xf32> to vector<1x8x8xf32>
    %15 = tpu.concatenate %11, %12, %13, %14 in 0 : vector<1x8x8xf32>, vector<1x8x8xf32>, vector<1x8x8xf32>, vector<1x8x8xf32> -> vector<4x8x8xf32>
    %16 = vector.extract_strided_slice %6 {offsets = [0, 32], sizes = [8, 8], strides = [1, 1]} : vector<8x96xf32> to vector<8x8xf32>
    %17 = vector.extract_strided_slice %6 {offsets = [0, 40], sizes = [8, 8], strides = [1, 1]} : vector<8x96xf32> to vector<8x8xf32>
    %18 = vector.extract_strided_slice %6 {offsets = [0, 48], sizes = [8, 8], strides = [1, 1]} : vector<8x96xf32> to vector<8x8xf32>
    %19 = vector.extract_strided_slice %6 {offsets = [0, 56], sizes = [8, 8], strides = [1, 1]} : vector<8x96xf32> to vector<8x8xf32>
    %20 = vector.shape_cast %16 : vector<8x8xf32> to vector<1x8x8xf32>
    %21 = vector.shape_cast %17 : vector<8x8xf32> to vector<1x8x8xf32>
    %22 = vector.shape_cast %18 : vector<8x8xf32> to vector<1x8x8xf32>
    %23 = vector.shape_cast %19 : vector<8x8xf32> to vector<1x8x8xf32>
    %24 = tpu.concatenate %20, %21, %22, %23 in 0 : vector<1x8x8xf32>, vector<1x8x8xf32>, vector<1x8x8xf32>, vector<1x8x8xf32> -> vector<4x8x8xf32>
    %25 = vector.extract_strided_slice %6 {offsets = [0, 64], sizes = [8, 8], strides = [1, 1]} : vector<8x96xf32> to vector<8x8xf32>
    %26 = vector.extract_strided_slice %6 {offsets = [0, 72], sizes = [8, 8], strides = [1, 1]} : vector<8x96xf32> to vector<8x8xf32>
    %27 = vector.extract_strided_slice %6 {offsets = [0, 80], sizes = [8, 8], strides = [1, 1]} : vector<8x96xf32> to vector<8x8xf32>
    %28 = vector.extract_strided_slice %6 {offsets = [0, 88], sizes = [8, 8], strides = [1, 1]} : vector<8x96xf32> to vector<8x8xf32>
    %29 = vector.shape_cast %25 : vector<8x8xf32> to vector<1x8x8xf32>
    %30 = vector.shape_cast %26 : vector<8x8xf32> to vector<1x8x8xf32>
    %31 = vector.shape_cast %27 : vector<8x8xf32> to vector<1x8x8xf32>
    %32 = vector.shape_cast %28 : vector<8x8xf32> to vector<1x8x8xf32>
    %33 = tpu.concatenate %29, %30, %31, %32 in 0 : vector<1x8x8xf32>, vector<1x8x8xf32>, vector<1x8x8xf32>, vector<1x8x8xf32> -> vector<4x8x8xf32>
    %c0_6 = arith.constant 0 : index
    %c0_7 = arith.constant 0 : index
    %34 = vector.load %arg8[%c0_6, %c0_7] : memref<8x8xf32, #tpu.memory_space<vmem>>, vector<8x8xf32>
    %c0_8 = arith.constant 0 : index
    %c0_9 = arith.constant 0 : index
    %35 = memref.load %arg9[%c0_8, %c0_9] : memref<1x1xf32, #tpu.memory_space<smem>>
    %36 = vector.broadcast %35 : f32 to vector<8x8xf32>
    %37 = arith.mulf %34, %36 : vector<8x8xf32>
    %c0_10 = arith.constant 0 : index
    %c0_11 = arith.constant 0 : index
    %c0_12 = arith.constant 0 : index
    %38 = vector.load %arg10[%c0_10, %c0_11, %c0_12] : memref<1x1x8xf32, #tpu.memory_space<vmem>>, vector<1x1x8xf32>
    %39 = vector.shape_cast %38 : vector<1x1x8xf32> to vector<1x8xf32>
    %40 = vector.broadcast %39 : vector<1x8xf32> to vector<8x8xf32>
    %41 = arith.addf %37, %40 : vector<8x8xf32>
    "tpu.trace_start"() <{level = 10 : i32, message = "hqd,hkd->hqk"}> : () -> ()
    %cst_13 = arith.constant dense<0.000000e+00> : vector<4x8x8xf32>
    %42 = tpu.matmul %15, %24, %cst_13 {dimension_numbers = #tpu.dot_dimension_numbers<[2], [2], [1], [1], [0, 0, 0, 1, 1, 1], [0], [0]>} : vector<4x8x8xf32>, vector<4x8x8xf32>, vector<4x8x8xf32> -> vector<4x8x8xf32>
    "tpu.trace_stop"() : () -> ()
    %cst_14 = arith.constant 0.353553385 : f32
    %43 = vector.broadcast %cst_14 : f32 to vector<4x8x8xf32>
    %44 = arith.mulf %42, %43 : vector<4x8x8xf32>
    %45 = vector.shape_cast %41 : vector<8x8xf32> to vector<1x8x8xf32>
    %46 = vector.broadcast %45 : vector<1x8x8xf32> to vector<4x8x8xf32>
    %47 = arith.addf %44, %46 : vector<4x8x8xf32>
    %cst_15 = arith.constant dense<0xFF800000> : vector<4x8xf32>
    %48 = vector.multi_reduction <maximumf>, %47, %cst_15 [2] : vector<4x8x8xf32> to vector<4x8xf32>
    %49 = vector.shape_cast %48 : vector<4x8xf32> to vector<4x8x1xf32>
    %50 = vector.broadcast %49 : vector<4x8x1xf32> to vector<4x8x8xf32>
    %51 = arith.subf %47, %50 : vector<4x8x8xf32>
    %52 = math.exp %51 : vector<4x8x8xf32>
    %cst_16 = arith.constant dense<0.000000e+00> : vector<4x8xf32>
    %53 = vector.multi_reduction <add>, %52, %cst_16 [2] : vector<4x8x8xf32> to vector<4x8xf32>
    %54 = vector.shape_cast %53 : vector<4x8xf32> to vector<4x8x1xf32>
    %55 = tpu.reciprocal %54 : vector<4x8x1xf32> -> vector<4x8x1xf32>
    %56 = vector.broadcast %55 : vector<4x8x1xf32> to vector<4x8x8xf32>
    %57 = arith.mulf %52, %56 : vector<4x8x8xf32>
    "tpu.trace_start"() <{level = 10 : i32, message = "hqk,hkd->hqd"}> : () -> ()
    %cst_17 = arith.constant dense<0.000000e+00> : vector<4x8x8xf32>
    %58 = tpu.matmul %57, %33, %cst_17 {dimension_numbers = #tpu.dot_dimension_numbers<[2], [1], [1], [2], [0, 0, 0, 1, 1, 2], [0], [0]>} : vector<4x8x8xf32>, vector<4x8x8xf32>, vector<4x8x8xf32> -> vector<4x8x8xf32>
    "tpu.trace_stop"() : () -> ()
    %c0_18 = arith.constant 0 : index
    %c0_19 = arith.constant 0 : index
    %c0_20 = arith.constant 0 : index
    %59 = vector.load %arg4[%c0_18, %c0_19, %c0_20] : memref<4x8x32xf32, #tpu.memory_space<vmem>>, vector<4x8x32xf32>
    "tpu.trace_start"() <{level = 10 : i32, message = "hqd,hdo->hqo"}> : () -> ()
    %cst_21 = arith.constant dense<0.000000e+00> : vector<4x8x32xf32>
    %60 = tpu.matmul %58, %59, %cst_21 {dimension_numbers = #tpu.dot_dimension_numbers<[2], [1], [1], [2], [0, 0, 0, 1, 1, 2], [0], [0]>} : vector<4x8x8xf32>, vector<4x8x32xf32>, vector<4x8x32xf32> -> vector<4x8x32xf32>
    "tpu.trace_stop"() : () -> ()
    %cst_22 = arith.constant dense<0.000000e+00> : vector<8x32xf32>
    %61 = vector.multi_reduction <add>, %60, %cst_22 [0] : vector<4x8x32xf32> to vector<8x32xf32>
    %c0_23 = arith.constant 0 : index
    %c0_24 = arith.constant 0 : index
    %62 = vector.load %arg5[%c0_23, %c0_24] : memref<1x32xf32, #tpu.memory_space<vmem>>, vector<1x32xf32>
    %63 = vector.broadcast %62 : vector<1x32xf32> to vector<8x32xf32>
    %64 = arith.addf %61, %63 : vector<8x32xf32>
    %65 = arith.addf %64, %1 : vector<8x32xf32>
    %cst_25 = arith.constant dense<0.000000e+00> : vector<8xf32>
    %66 = vector.multi_reduction <add>, %65, %cst_25 [1] : vector<8x32xf32> to vector<8xf32>
    %67 = vector.shape_cast %66 : vector<8xf32> to vector<8x1xf32>
    %cst_26 = arith.constant 3.200000e+01 : f32
    %68 = vector.broadcast %cst_26 : f32 to vector<8x1xf32>
    %69 = arith.divf %67, %68 : vector<8x1xf32>
    %70 = vector.broadcast %69 : vector<8x1xf32> to vector<8x32xf32>
    %71 = arith.subf %65, %70 : vector<8x32xf32>
    %72 = arith.mulf %71, %71 : vector<8x32xf32>
    %cst_27 = arith.constant dense<0.000000e+00> : vector<8xf32>
    %73 = vector.multi_reduction <add>, %72, %cst_27 [1] : vector<8x32xf32> to vector<8xf32>
    %74 = vector.shape_cast %73 : vector<8xf32> to vector<8x1xf32>
    %cst_28 = arith.constant 3.200000e+01 : f32
    %75 = vector.broadcast %cst_28 : f32 to vector<8x1xf32>
    %76 = arith.divf %74, %75 : vector<8x1xf32>
    %77 = vector.broadcast %69 : vector<8x1xf32> to vector<8x32xf32>
    %78 = arith.subf %65, %77 : vector<8x32xf32>
    %cst_29 = arith.constant 9.99999996E-13 : f32
    %79 = vector.broadcast %cst_29 : f32 to vector<8x1xf32>
    %80 = arith.addf %76, %79 : vector<8x1xf32>
    %81 = math.rsqrt %80 : vector<8x1xf32>
    %82 = vector.broadcast %81 : vector<8x1xf32> to vector<8x32xf32>
    %83 = arith.mulf %78, %82 : vector<8x32xf32>
    %c0_30 = arith.constant 0 : index
    %c0_31 = arith.constant 0 : index
    %84 = vector.load %arg6[%c0_30, %c0_31] : memref<1x32xf32, #tpu.memory_space<vmem>>, vector<1x32xf32>
    %85 = vector.broadcast %84 : vector<1x32xf32> to vector<8x32xf32>
    %86 = arith.mulf %83, %85 : vector<8x32xf32>
    %c0_32 = arith.constant 0 : index
    %c0_33 = arith.constant 0 : index
    %87 = vector.load %arg7[%c0_32, %c0_33] : memref<1x32xf32, #tpu.memory_space<vmem>>, vector<1x32xf32>
    %88 = vector.broadcast %87 : vector<1x32xf32> to vector<8x32xf32>
    %89 = arith.addf %86, %88 : vector<8x32xf32>
    %c0_34 = arith.constant 0 : index
    %c0_35 = arith.constant 0 : index
    %c0_36 = arith.constant 0 : index
    %90 = vector.load %arg11[%c0_34, %c0_35, %c0_36] : memref<1x8x32xf32, #tpu.memory_space<vmem>>, vector<1x8x32xf32>
    %91 = vector.shape_cast %90 : vector<1x8x32xf32> to vector<8x32xf32>
    %92 = vector.shape_cast %89 : vector<8x32xf32> to vector<1x8x32xf32>
    tpu.vector_store %arg11[%c0_34, %c0_35, %c0_36], %92 {strides = array<i32>} : memref<1x8x32xf32, #tpu.memory_space<vmem>>, vector<1x8x32xf32>,
    return
  }
  func.func @transform_0(%arg0: i32) -> (i32, i32, i32) {
    %c0_i32 = arith.constant 0 : i32
    %c0_i32_0 = arith.constant 0 : i32
    %c0_i32_1 = arith.constant 0 : i32
    return %arg0, %c0_i32, %c0_i32_0 : i32, i32, i32
  }
  func.func @transform_1(%arg0: i32) -> (i32, i32) {
    %c0_i32 = arith.constant 0 : i32
    %c0_i32_0 = arith.constant 0 : i32
    %c0_i32_1 = arith.constant 0 : i32
    return %c0_i32, %c0_i32_0 : i32, i32
  }
  func.func @transform_2(%arg0: i32) -> (i32, i32) {
    %c0_i32 = arith.constant 0 : i32
    %c0_i32_0 = arith.constant 0 : i32
    %c0_i32_1 = arith.constant 0 : i32
    return %c0_i32, %c0_i32_0 : i32, i32
  }
  func.func @transform_3(%arg0: i32) -> (i32, i32, i32) {
    %c0_i32 = arith.constant 0 : i32
    %c0_i32_0 = arith.constant 0 : i32
    %c0_i32_1 = arith.constant 0 : i32
    %c0_i32_2 = arith.constant 0 : i32
    return %c0_i32, %c0_i32_0, %c0_i32_1 : i32, i32, i32
  }
  func.func @transform_4(%arg0: i32) -> (i32, i32) {
    %c0_i32 = arith.constant 0 : i32
    %c0_i32_0 = arith.constant 0 : i32
    %c0_i32_1 = arith.constant 0 : i32
    return %c0_i32, %c0_i32_0 : i32, i32
  }
  func.func @transform_5(%arg0: i32) -> (i32, i32) {
    %c0_i32 = arith.constant 0 : i32
    %c0_i32_0 = arith.constant 0 : i32
    %c0_i32_1 = arith.constant 0 : i32
    return %c0_i32, %c0_i32_0 : i32, i32
  }
  func.func @transform_6(%arg0: i32) -> (i32, i32) {
    %c0_i32 = arith.constant 0 : i32
    %c0_i32_0 = arith.constant 0 : i32
    %c0_i32_1 = arith.constant 0 : i32
    return %c0_i32, %c0_i32_0 : i32, i32
  }
  func.func @transform_7(%arg0: i32) -> (i32, i32) {
    %c0_i32 = arith.constant 0 : i32
    %c0_i32_0 = arith.constant 0 : i32
    %c0_i32_1 = arith.constant 0 : i32
    return %c0_i32, %c0_i32_0 : i32, i32
  }
  func.func @transform_8(%arg0: i32) -> (i32, i32) {
    %c0_i32 = arith.constant 0 : i32
    %c0_i32_0 = arith.constant 0 : i32
    %c0_i32_1 = arith.constant 0 : i32
    return %c0_i32, %c0_i32_0 : i32, i32
  }
  func.func @transform_9(%arg0: i32) -> (i32, i32, i32) {
    %c0_i32 = arith.constant 0 : i32
    %c0_i32_0 = arith.constant 0 : i32
    %c0_i32_1 = arith.constant 0 : i32
    return %arg0, %c0_i32, %c0_i32_0 : i32, i32, i32
  }
  func.func @transform_10(%arg0: i32) -> (i32, i32, i32) {
    %c0_i32 = arith.constant 0 : i32
    %c0_i32_0 = arith.constant 0 : i32
    %c0_i32_1 = arith.constant 0 : i32
    return %arg0, %c0_i32, %c0_i32_0 : i32, i32, i32
  }
}

</mosaic_0001>

<bundles_post_ra>
// kernel: tpu_custom_call.1
= control target key start
LH: loop header
LB: loop body
LE: loop exit
PB: predicated region body
PF: predicated region fallthrough
CT: control target
= control target key end

     0   :  { %s2458_s0 = inlined_call_operand.hbm [shape: f32[2,8,32], index: 0, kind: input, shape index: {}]   ;;  %s2459_s1 = inlined_call_operand.hbm [shape: f32[32,96], index: 1, kind: input, shape index: {}]   ;;  %s2460_s2 = inlined_call_operand.vmem [shape: f32[1,96], index: 2, kind: input, shape index: {}]   ;;  %s2461_s3 = inlined_call_operand.hbm [shape: f32[4,8,32], index: 3, kind: input, shape index: {}]   ;;  %s2462_s4 = inlined_call_operand.vmem [shape: f32[1,32], index: 4, kind: input, shape index: {}]   ;;  %s2463_s5 = inlined_call_operand.vmem [shape: f32[1,32], index: 5, kind: input, shape index: {}]   ;;  %s2464_s6 = inlined_call_operand.vmem [shape: f32[1,32], index: 6, kind: input, shape index: {}]   ;;  %s2465_s7 = inlined_call_operand.vmem [shape: f32[8,8], index: 7, kind: input, shape index: {}]   ;;  %s2466_s8 = inlined_call_operand.<no memory space> [shape: f32[1,1], index: 8, kind: input, shape index: {}]   ;;  %s2467_s9 = inlined_call_operand.vmem [shape: f32[2,1,8], index: 9, kind: input, shape index: {}]   ;;  %s2468_s10 = inlined_call_operand.hbm [shape: f32[2,8,32], index: 10, kind: output, shape index: {}]  }
   0x1   :  { %15 = sst [smem:[#allocation2]] %s2466_s8 }
   0x2   :  { %16 = vsyncpa [#allocation4], 0 }
   0x3   :  { %18 = vsyncpa [#allocation4 + $0x1], 0 }
   0x4   :  { %19 = vsyncpa [#allocation7], 0 }
   0x5   :  { %20 = vsyncpa [#allocation5], 0 }
   0x6   :  { %22 = vsyncpa [#allocation5 + $0x1], 0  ;;  %s2109_s15 = smov 0   ;;  %s2111_s16 = smov 0  }
   0x7   :  { %s2113_s17 = smov 0   ;;  %s2115_s18 = smov 0  }
   0x8 LB: > { %s2130_s8 = sadd.s32 4294967295, %s2035_s18   ;;  %s1640_s19 = sadd.s32 4294967294, %s2035_s18   ;;  %s2035_s18 = sphi %s2115_s18, %s2491_s18   ;;  %s2031_s17 = sphi %s2113_s17, %s2490_s17   ;;  %s2027_s16 = sphi %s2111_s16, %s2489_s16   ;;  %s2023_s15 = sphi %s2109_s15, %s2488_s15  }
   0x9   : > { %p48_p0 = scmp.ne.s32.totalorder %s2027_s16, %s2023_s15  ;;  %p2469_p1 = scmp.eq.s32.totalorder %s2130_s8, 0 }
   0xa   : > { %p272_p3 = scmp.eq.s32.totalorder %s1640_s19, 1  ;;  %p1641_p5 = scmp.ge.s32.totalorder %s2035_s18, 1 }
   0xb   : > { %p2139_p4 = por %p2469_p1, %p48_p0  ;;  %p279_p7 = scmp.lt.s32.totalorder %s2035_s18, 3 }
   0xc   : > { %p2144_p6 = por %p272_p3, %p48_p0  ;;  %s2037_s23 = smov [#allocation6]  }
   0xd   : > { %s2473_s20 = scalar_select %p2139_p4, 1, 0 }
   0xe   : > { %s2474_s21 = scalar_select %p2144_p6, 1, 0 }
   0xf   : > { %p2149_p8 = pnand %p1641_p5, %p279_p7  ;;  %s291_s24 = sshll.u32 %s2037_s23, 4  ;;  %s2153_s24 = int_to_ptr.vmem [resolvable:$true] %s291_s24 }
  0x10   : > { %2475 = sst [smem:[#allocation13_spill]] %s2474_s21  ;;  %s2038_s26 = smov [#allocation8]  }
  0x11   : > { %p1796_p9 = pneg %p2149_p8  ;;  %s307_s27 = sshll.u32 %s2038_s26, 4  ;;  %s2164_s27 = int_to_ptr.vmem [resolvable:$true] %s307_s27 }
  0x12   : > { %s1879_s30 = scalar_lea.hbm %s2459_s1, 512 }
  0x13   : > { %p2160_p11 = pnand %p1796_p9, %p2469_p1  ;;  %p1880_p12 = scmp.ne.s32.totalorder %s2459_s1, %s1879_s30 }
  0x14   : > { %p1886_p5 = scmp.lt.u32.totalorder %s1879_s30, %s2459_s1 }
  0x15   : > { %p1881_p13 = pneg %p2160_p11 }
  0x17   : > { %p1882_p0 = pnand %p1881_p13, %p1880_p12 }
  0x19   : > { %p1883_p3 = pneg %p1882_p0 }
  0x1b   : > { %p1888_p7 = pnand %p1886_p5, %p1883_p3 }
  0x1d   : > { %1891 = shalt.err (!%p1888_p7)
}
  0x1e   : > { %s1892_s19 = scalar_lea.vmem %s2153_s24, 512  ;;  %p1900_p2 = scmp.lt.s32.totalorder %s2153_s24, %s2153_s24 }
  0x1f   : > { %p1893_p9 = scmp.ne.s32.totalorder %s2153_s24, %s1892_s19  ;;  %p1901_p12 = scmp.lt.s32.totalorder %s1892_s19, %s1892_s19 }
  0x21   : > { %p1895_p10 = pnand %p1893_p9, %p1881_p13  ;;  %p1902_p0 = por %p1901_p12, %p1900_p2 }
  0x23   : > { %p1896_p1 = pneg %p1895_p10 }
  0x25   : > { %p1903_p6 = pnand %p1902_p0, %p1896_p1 }
  0x27   : > { %1906 = shalt.err (!%p1903_p6)
}
  0x28   : > { %s2039_s23 = smov 128   ;;  %s2040_s26 = smov 8  }
  0x29   : > { %1799 = dma.hbm_to_vmem [thread:$0]  (!%p2160_p11), %s2459_s1, 512, %s2153_s24, [#allocation7], %s2039_s23, %s2039_s23, %s2040_s26  }
  0x2a   : > { %s1907_s12 = scalar_lea.hbm %s2461_s3, 512 }
  0x2b   : > { %p1908_p2 = scmp.ne.s32.totalorder %s2461_s3, %s1907_s12  ;;  %p1914_p10 = scmp.lt.u32.totalorder %s1907_s12, %s2461_s3 }
  0x2d   : > { %p1910_p1 = pnand %p1908_p2, %p1881_p13 }
  0x2f   : > { %p1911_p6 = pneg %p1910_p1 }
  0x31   : > { %p1916_p3 = pnand %p1914_p10, %p1911_p6 }
  0x33   : > { %1919 = shalt.err (!%p1916_p3)
}
  0x34   : > { %s1920_s24 = scalar_lea.vmem %s2164_s27, 512  ;;  %p1928_p12 = scmp.lt.s32.totalorder %s2164_s27, %s2164_s27 }
  0x35   : > { %p1921_p5 = scmp.ne.s32.totalorder %s2164_s27, %s1920_s24  ;;  %p1929_p0 = scmp.lt.s32.totalorder %s1920_s24, %s1920_s24 }
  0x37   : > { %p1923_p7 = pnand %p1921_p5, %p1881_p13  ;;  %p1930_p2 = por %p1929_p0, %p1928_p12 }
  0x39   : > { %p1924_p9 = pneg %p1923_p7 }
  0x3b   : > { %p1931_p1 = pnand %p1930_p2, %p1924_p9 }
  0x3d   : > { %1934 = shalt.err (!%p1931_p1)
}
  0x3e   : > { %1802 = dma.hbm_to_vmem [thread:$0]  (!%p2160_p11), %s2461_s3, 512, %s2164_s27, [#allocation7], %s2039_s23, %s2039_s23, %s2040_s26  }
  0x3f   : > { %s2219_s29 = sadd.s32 1, %s2035_s18   ;;  %s35_s25 = sadd.s32 1, %s2031_s17 }
  0x40   : > { %s32_s30 = ssub.s32 %s2035_s18, %s2219_s29  ;;  %p42_p13 = scmp.ne.s32.totalorder %s2031_s17, %s2027_s16 }
  0x41   : > { %p33_p6 = scmp.eq.s32.totalorder %s32_s30, 0  ;;  %p43_p10 = scmp.eq.s32.totalorder %s2035_s18, 0 }
  0x42   : > { %p2478_p3 = scmp.eq.s32.totalorder %s2130_s8, 1  ;;  %p1813_p7 = scmp.lt.s32.totalorder %s2035_s18, 2 }
  0x43   : > { %s2235_s12 = scalar_select %p33_p6, %s2031_s17, %s35_s25  }
  0x44   : > { %p2229_p5 = por %p2478_p3, %p42_p13  ;;  %p44_p9 = por %p43_p10, %p42_p13 }
  0x45   : > { %s336_s13 = sand.u32 1, %s2031_s17   ;;  %s1646_s27 = sshll.u32 %s2035_s18, 7 }
  0x46   : > { %s2479_s11 = scalar_select %p2229_p5, 1, 0 }
  0x47   : > { %s1645_s14 = sshll.u32 %s336_s13, 3  ;;  %s2242_s19 = scalar_lea.hbm %s2458_s0, %s1646_s27 }
  0x48   : > { %s340_s24 = scalar_lea.vmem [#allocation3], %s1645_s14  ;;  %p2246_p11 = pnand %p1813_p7, %p44_p9 }
  0x49   : > { %s347_s21 = sshll.u32 %s340_s24, 4  ;;  %s337_s25 = scalar_lea.sflag [#allocation4], %s336_s13  ;;  %s2244_s21 = int_to_ptr.vmem [resolvable:$true] %s347_s21 }
  0x4a   : > { %s1935_s30 = scalar_lea.hbm %s2242_s19, 128  ;;  %p1937_p0 = pneg %p2246_p11 }
  0x4b   : > { %p1936_p12 = scmp.ne.s32.totalorder %s2242_s19, %s1935_s30  ;;  %s1940_s23 = scalar_lea.hbm %s2458_s0, 256 }
  0x4c   : > { %p1941_p13 = scmp.lt.u32.totalorder %s2242_s19, %s2458_s0  ;;  %p1942_p6 = scmp.lt.u32.totalorder %s1940_s23, %s1935_s30 }
  0x4d   : > { %p1938_p2 = pnand %p1937_p0, %p1936_p12  ;;  %p1944_p3 = scmp.lt.u32.totalorder %s1935_s30, %s2242_s19 }
  0x4e   : > { %p1943_p10 = por %p1942_p6, %p1941_p13 }
  0x4f   : > { %p1939_p1 = pneg %p1938_p2 }
  0x50   : > { %p1945_p7 = por %p1944_p3, %p1943_p10 }
  0x52   : > { %p1946_p9 = pnand %p1945_p7, %p1939_p1 }
  0x54   : > { %1949 = shalt.err (!%p1946_p9)
}
  0x55   : > { %s1950_s13 = scalar_lea.vmem %s2244_s21, 128  ;;  %s2041_s27 = smov [#allocation3]  }
  0x56   : > { %p1951_p12 = scmp.ne.s32.totalorder %s2244_s21, %s1950_s13  ;;  %s1955_s14 = sshll.u32 %s2041_s27, 4  ;;  %s1956_s14 = int_to_ptr.vmem [resolvable:$false] %s1955_s14 }
  0x57   : > { %s1957_s26 = scalar_lea.vmem %s1956_s14, 256  ;;  %p1958_p4 = scmp.lt.s32.totalorder %s2244_s21, %s1956_s14 }
  0x58   : > { %p1953_p2 = pnand %p1951_p12, %p1937_p0  ;;  %p1959_p13 = scmp.lt.s32.totalorder %s1957_s26, %s1950_s13 }
  0x5a   : > { %p1954_p5 = pneg %p1953_p2  ;;  %p1960_p6 = por %p1959_p13, %p1958_p4 }
  0x5c   : > { %p1961_p10 = pnand %p1960_p6, %p1954_p5 }
  0x5e   : > { %1964 = shalt.err (!%p1961_p10)
}
  0x5f   : > { %1806 = dma.hbm_to_vmem [thread:$0]  (!%p2246_p11), %s2242_s19, 128, %s2244_s21, %s337_s25  }
  0x60   : > { %362 = sbr.rel (%p2149_p8) target bundleno = 1859 (0x743), region = 60  ;;  %s2278_s30 = sand.u32 (!%p2149_p8), 1, %s2027_s16  }
  0x61   : > { %s1648_s23 = sshll.u32 (!%p2149_p8), %s2278_s30, 3  ;;  %s365_s24 = scalar_lea.sflag (!%p2149_p8), [#allocation4], %s2278_s30 }
  0x62   : > { %s368_s13 = scalar_lea.vmem (!%p2149_p8), [#allocation3], %s1648_s23  ;;  %p2481_p4 = scmp.ne.s32.totalorder (!%p2149_p8), %s2473_s20, 0 }
  0x67   : > { %2010 = dma.done.wait (%p2481_p4), %s365_s24, 128  }
  0x68   : > { %2012 = vsyncadd (%p2481_p4), %s365_s24, 4294967168  ;;  %p2482_p5 = scmp.eq.s32.totalorder %s2130_s8, 0 }
  0x6a   : > { %2014 = dma.done.wait (%p2482_p5), [#allocation7], 1024   ;;  %p2483_p8 = pmov %p2482_p5 }
  0x6b   : > { %v2042_v0 = vmov 0.0|0.0   ;;  %vm2043_vm0 = vmmov 0   ;;  %v2044_v1 = vmov 0.0   ;;  %v420_v2 = vld [vmem:[#allocation6] sm:$0xff]  ;;  %v421_v3 = vld [vmem:[#allocation6 + $0x8] sm:$0xff]  ;;  %v422_v4 = vld [vmem:[#allocation6 + $0x10] sm:$0xff] }
  0x6c   : > { %2016 = vsyncadd (%p2483_p8), [#allocation7], 4294966272  ;;  %1778 = vmatprep.subr.bf16.mxu0 %v2042_v0  ;;  %1715 = vmatprep.mubr.msk.f32.mxu0 %vm2043_vm0, %v2044_v1  ;;  %v1779_v5 = vpack.c.bf16 %v421_v3, %v420_v2  ;;  %v423_v6 = vld [vmem:[#allocation6 + $0x18] sm:$0xff]  ;;  %vm431_vm1 = vcmask 261120   ;;  %v1652_v9 = vld [vmem:[%s2460_s2] ss:$0 sm:$0xff] }
  0x6d   : > { %1718 = vmatprep.subr.mxu1 %v2044_v1  ;;  %1720 = vmatprep.mubr.msk.f32.mxu1 %vm2043_vm0, %v2044_v1  ;;  %v1782_v7 = vpack.c.bf16 %v423_v6, %v422_v4  ;;  %v2297_v8 = vld [vmem:[%s368_s13] sm:$0xff]  ;;  %s2045_s19 = smov 104   ;;  %s2046_s21 = smov 120   ;;  %vm526_vm2 = vcmask 64512  }
  0x6e   : > { %1780 = vmatpush3.bf16.msra.mxu0 %v1779_v5  ;;  %s2047_s28 = smov 96   ;;  %s2048_s25 = smov 112   ;;  %v512_v20 = vld [vmem:[%s2465_s7] sm:$0xff] }
  0x6f   : > { %1781 = vmatprep.subr.bf16.mxu0 %v2042_v0  ;;  %s513_s27 = sld [smem:[#allocation2]]  ;;  %p416_p11 = scmp.lt.s32.totalorder %s2130_s8, 1 }
  0x70   : > { %s1675_s24 = sshll.u32 %s2130_s8, 7  ;;  %s415_s13 = scalar_lea.vmem [#allocation9], %s1648_s23 }
  0x71   : > { %s417_s14 = scalar_select %p416_p11, %s2130_s8, 1 }
  0x72   : > { %1783 = vmatpush3.bf16.msra.mxu0 %v1782_v7  ;;  %s1542_s20 = sshll.u32 %s415_s13, 4  ;;  %p2484_p1 = scmp.ne.s32.totalorder %s2479_s11, 0  ;;  %s2415_s20 = int_to_ptr.vmem [resolvable:$true] %s1542_s20 }
  0x73   : > { %1728 = vmatprep.subr.mxu0 %v2044_v1  ;;  %s418_s22 = scalar_lea.vmem %s2467_s9, %s417_s14  ;;  %s2050_s8 = smov [#allocation9]  }
  0x74   : > { %v1654_v23 = vld [vmem:[%s418_s22] ss:$0 sm:$0xff]  ;;  %s1969_s23 = sshll.u32 %s2050_s8, 4  ;;  %s1970_s23 = int_to_ptr.vmem [resolvable:$false] %s1969_s23 }
  0x75   : > { %1716 = vmatmul.mubr.msk.f32.vlgmr.msra.gmra.mrb[0].mxu0 %vm431_vm1, %v2297_v8  ;;  %v514_v21 = vstv %s513_s27  ;;  %s1971_s27 = scalar_lea.vmem %s1970_s23, 256  ;;  %p1972_p9 = scmp.lt.s32.totalorder %s2415_s20, %s1970_s23 }
  0x76   : > { %1730 = vmatprep.mubr.msk.f32.mxu0 %vm2043_vm0, %v2044_v1  ;;  %v515_v22 = vmul.f32 %v514_v21, %v512_v20  ;;  %v1186_v20 = vld [vmem:[#allocation8 + $0x8] sm:$0xff]  ;;  %v1187_v21 = vld [vmem:[#allocation8 + $0x10] sm:$0xff] }
  0x78   : > { %v523_v24 = vadd.f32 %v1654_v23, %v515_v22 }
 0x148   : > { %v501_v10 = vpop.f32.mrb[0].mxu0 }
 0x149   : > { %v2307_v11 = vadd.f32 %v1652_v9, %v501_v10  ;;  %v1717_v12 = vpop.f32.mrb[1].mxu0 }
 0x14b   : > { %510 = vrot.lane.b32.xlu1 %v2307_v11, %s2045_s19  ;;  %506 = vrot.lane.b32.xlu0 %v2307_v11, %s2046_s21  ;;  %s2049_s19 = smov 64   ;;  %s2413_s21 = scalar_lea.hbm %s2468_s10, %s1675_s24 }
 0x14f   : > { %524 = vrot.lane.b32.xlu1 %v2307_v11, %s2047_s28  ;;  %508 = vrot.lane.b32.xlu0 %v2307_v11, %s2048_s25  ;;  %s1965_s25 = scalar_lea.vmem %s2415_s20, 128 }
 0x150   : > { %p1966_p0 = scmp.ne.s32.totalorder %s2415_s20, %s1965_s25  ;;  %p1973_p12 = scmp.lt.s32.totalorder %s1971_s27, %s1965_s25 }
 0x152   : > { %p1967_p3 = pnand %p1966_p0, %p2484_p1  ;;  %p1974_p2 = por %p1973_p12, %p1972_p9 }
 0x154   : > { %p1968_p7 = pneg %p1967_p3 }
 0x156   : > { %p1975_p13 = pnand %p1974_p2, %p1968_p7 }
 0x1bd   : > { %v2313_v13 = vpop.permute.xlu1 %510  ;;  %v507_v14 = vpop.permute.xlu0 %506 }
 0x1be   : > { %601 = vrot.lane.b32.xlu0 %v507_v14, %s2047_s28 }
 0x1c1   : > { %v525_v15 = vpop.permute.xlu1 %524  ;;  %v2315_v16 = vpop.permute.xlu0 %508 }
 0x1c2   : > { %1719 = vmatpush3.xpose.msk.msra.mxu1 %vm526_vm2, %v525_v15  ;;  %753 = vrot.lane.b32.xlu0 %v2313_v13, %s2047_s28 }
 0x1c3   : > { %677 = vrot.lane.b32.xlu1 %v2315_v16, %s2047_s28  ;;  %1723 = vmatprep.subr.mxu1 %v2044_v1  ;;  %s1529_s28 = scalar_lea.sflag [#allocation5], %s2278_s30 }
 0x1c5   : > { %1721 = vmatmul.mubr.msk.f32.vlgmr.msra.gmra.mrb[0].mxu1 %vm526_vm2, %v2307_v11 }
 0x1c6   : > { %1725 = vmatprep.mubr.msk.f32.mxu1 %vm2043_vm0, %v2044_v1 }
 0x230   : > { %v602_v17 = vpop.permute.xlu0 %601 }
 0x231   : > { %1724 = vmatpush3.xpose.msk.msra.mxu1 %vm526_vm2, %v602_v17 }
 0x232   : > { %1733 = vmatprep.subr.mxu1 %v2044_v1 }
 0x234   : > { %1726 = vmatmul.mubr.msk.f32.vlgmr.msra.gmra.mrb[2].mxu1 %vm526_vm2, %v507_v14  ;;  %v754_v18 = vpop.permute.xlu0 %753 }
 0x235   : > { %v678_v19 = vpop.permute.xlu1 %677  ;;  %1734 = vmatpush3.xpose.msk.msra.mxu1 %vm526_vm2, %v754_v18  ;;  %1735 = vmatprep.mubr.msk.f32.mxu1 %vm2043_vm0, %v2044_v1 }
 0x236   : > { %1729 = vmatpush3.xpose.msk.msra.mxu0 %vm526_vm2, %v678_v19  ;;  %1743 = vmatprep.subr.mxu1 %v2044_v1  ;;  %v1185_v19 = vld [vmem:[#allocation8] sm:$0xff] }
 0x237   : > { %1738 = vmatprep.subr.mxu0 %v2044_v1 }
 0x238   : > { %1736 = vmatmul.mubr.msk.f32.vlgmr.msra.gmra.mrb[4].mxu1 %vm526_vm2, %v2313_v13 }
 0x239   : > { %1731 = vmatmul.mubr.msk.f32.vlgmr.msra.gmra.mrb[2].mxu0 %vm526_vm2, %v2315_v16  ;;  %1745 = vmatprep.mubr.msk.f32.mxu1 %vm2043_vm0, %v2044_v1 }
 0x23a   : > { %1740 = vmatprep.mubr.msk.f32.mxu0 %vm2043_vm0, %v2044_v1 }
 0x298   : > { %v597_v25 = vpop.f32.mrb[0].mxu1 }
 0x299   : > { %v829_v26 = vmul.f32 0.35355338, %v597_v25  ;;  %v1722_v27 = vpop.f32.mrb[1].mxu1 }
 0x29b   : > { %v833_v28 = vadd.f32 %v829_v26, %v523_v24 }
 0x29d   : > { %v837_v29 = vsel %vm526_vm2, %v833_v28, -inf }
 0x29e   : > { %838 = vmax.xlane.f32.xlu1 %v837_v29 }
 0x307   : > { %v673_v30 = vpop.f32.mrb[2].mxu1 }
 0x308   : > { %v830_v31 = vmul.f32 0.35355338, %v673_v30  ;;  %v1727_v32 = vpop.f32.mrb[3].mxu1 }
 0x30a   : > { %v834_v33 = vadd.f32 %v830_v31, %v523_v24 }
 0x30b   : > { %v825_v34 = vpop.f32.mrb[4].mxu1 }
 0x30c   : > { %v749_v35 = vpop.f32.mrb[2].mxu0  ;;  %v832_v36 = vmul.f32 0.35355338, %v825_v34  ;;  %v1737_v37 = vpop.f32.mrb[5].mxu1  ;;  %v840_v38 = vsel %vm526_vm2, %v834_v33, -inf }
 0x30d   : > { %v831_v39 = vmul.f32 0.35355338, %v749_v35  ;;  %v1732_v40 = vpop.f32.mrb[3].mxu0  ;;  %841 = vmax.xlane.f32.xlu0 %v840_v38 }
 0x30e   : > { %v836_v41 = vadd.f32 %v832_v36, %v523_v24 }
 0x30f   : > { %v835_v42 = vadd.f32 %v831_v39, %v523_v24  ;;  %v1188_v24 = vld [vmem:[#allocation8 + $0x18] sm:$0xff] }
 0x310   : > { %v846_v43 = vsel %vm526_vm2, %v836_v41, -inf }
 0x311   : > { %847 = vmax.xlane.f32.xlu1 %v846_v43  ;;  %v843_v44 = vsel %vm526_vm2, %v835_v42, -inf }
 0x312   : > { %844 = vmax.xlane.f32.xlu0 %v843_v44  ;;  %v1671_v44 = vld [vmem:[%s2462_s4] ss:$0 sm:$0xff] }
 0x322   : > { %957 = vrot.lane.b32.xlu1 %v507_v14, %s2049_s19 }
 0x328   : > { %881 = vrot.lane.b32.xlu0 %v2307_v11, %s2049_s19 }
 0x32b   : > { %v839_v45 = vpop.xlane.xlu1 %838 }
 0x32c   : > { %v849_v46 = vsub.f32 %v833_v28, %v839_v45 }
 0x32e   : > { %v853_v47 = vmul.f32 1.442695, %v849_v46 }
 0x330   : > { %1861 = vpow2.f32 %v853_v47 }
 0x33a   : > { %v1862_v48 = vpop.eup %1861 }
 0x33b   : > { %v861_v49 = vsel %vm526_vm2, %v1862_v48, 0.0 }
 0x347   : > { %862 = vadd.xlane.f32.xlu0 %v861_v49 }
 0x39a   : > { %v842_v50 = vpop.xlane.xlu0 %841 }
 0x39b   : > { %v850_v51 = vsub.f32 %v834_v33, %v842_v50 }
 0x39d   : > { %v855_v52 = vmul.f32 1.442695, %v850_v51 }
 0x39e   : > { %v848_v53 = vpop.xlane.xlu1 %847 }
 0x39f   : > { %1863 = vpow2.f32 %v855_v52  ;;  %v852_v54 = vsub.f32 %v836_v41, %v848_v53  ;;  %v845_v55 = vpop.xlane.xlu0 %844 }
 0x3a0   : > { %v851_v56 = vsub.f32 %v835_v42, %v845_v55 }
 0x3a1   : > { %v859_v57 = vmul.f32 1.442695, %v852_v54 }
 0x3a2   : > { %v857_v58 = vmul.f32 1.442695, %v851_v56  ;;  %v958_v59 = vpop.permute.xlu1 %957 }
 0x3a3   : > { %1865 = vpow2.f32 %v859_v57  ;;  %v882_v60 = vpop.permute.xlu0 %881  ;;  %1744 = vmatpush3.msra.mxu1 %v958_v59  ;;  %v1673_v59 = vld [vmem:[%s2464_s6] ss:$0 sm:$0xff] }
 0x3a4   : > { %1867 = vpow2.f32 %v857_v58  ;;  %1739 = vmatpush3.msra.mxu0 %v882_v60  ;;  %1753 = vmatprep.subr.mxu1 %v2044_v1 }
 0x3a5   : > { %1748 = vmatprep.subr.mxu0 %v2044_v1 }
 0x3a9   : > { %v1864_v61 = vpop.eup %1863 }
 0x3aa   : > { %v864_v62 = vsel %vm526_vm2, %v1864_v61, 0.0 }
 0x3ab   : > { %865 = vadd.xlane.f32.xlu1 %v864_v62 }
 0x3ad   : > { %v1866_v63 = vpop.eup %1865 }
 0x3ae   : > { %v1868_v0 = vpop.eup %1867  ;;  %v870_v2 = vsel %vm526_vm2, %v1866_v63, 0.0 }
 0x3af   : > { %871 = vadd.xlane.f32.xlu1 %v870_v2  ;;  %v867_v3 = vsel %vm526_vm2, %v1868_v0, 0.0 }
 0x3b0   : > { %868 = vadd.xlane.f32.xlu0 %v867_v3 }
 0x3c0   : > { %1033 = vrot.lane.b32.xlu1 %v2315_v16, %s2049_s19 }
 0x3c6   : > { %1109 = vrot.lane.b32.xlu0 %v2313_v13, %s2049_s19 }
 0x3d4   : > { %v863_v4 = vpop.xlane.xlu0 %862 }
 0x3d5   : > { %1869 = vrcp.f32 %v863_v4 }
 0x3df   : > { %v1870_v5 = vpop.eup %1869 }
 0x3e0   : > { %v877_v6 = vmul.f32 %v1870_v5, %v1862_v48 }
 0x3e2   : > { %1741 = vmatmul.mubr.msk.f32.vlgmr.msra.gmra.mrb[4].mxu0 %vm526_vm2, %v877_v6 }
 0x3e3   : > { %1750 = vmatprep.mubr.msk.f32.mxu0 %vm2043_vm0, %v2044_v1 }
 0x438   : > { %v866_v7 = vpop.xlane.xlu1 %865 }
 0x439   : > { %1871 = vrcp.f32 %v866_v7 }
 0x43c   : > { %v872_v9 = vpop.xlane.xlu1 %871 }
 0x43d   : > { %1873 = vrcp.f32 %v872_v9  ;;  %v869_v10 = vpop.xlane.xlu0 %868 }
 0x43e   : > { %1875 = vrcp.f32 %v869_v10 }
 0x440   : > { %v1034_v11 = vpop.permute.xlu1 %1033 }
 0x441   : > { %1749 = vmatpush3.msra.mxu0 %v1034_v11  ;;  %v1110_v14 = vpop.permute.xlu0 %1109 }
 0x442   : > { %1758 = vmatprep.subr.mxu0 %v2044_v1 }
 0x443   : > { %v1872_v12 = vpop.eup %1871 }
 0x444   : > { %v878_v13 = vmul.f32 %v1872_v12, %v1864_v61 }
 0x446   : > { %1746 = vmatmul.mubr.msk.f32.vlgmr.msra.gmra.mrb[6].mxu1 %vm526_vm2, %v878_v13 }
 0x447   : > { %v1874_v15 = vpop.eup %1873  ;;  %1754 = vmatpush3.msra.mxu1 %v1110_v14  ;;  %1755 = vmatprep.mubr.msk.f32.mxu1 %vm2043_vm0, %v2044_v1 }
 0x448   : > { %v1876_v16 = vpop.eup %1875  ;;  %v880_v17 = vmul.f32 %v1874_v15, %v1866_v63  ;;  %1763 = vmatprep.subr.mxu1 %v2044_v1 }
 0x449   : > { %v879_v18 = vmul.f32 %v1876_v16, %v1868_v0 }
 0x44a   : > { %1756 = vmatmul.mubr.msk.f32.vlgmr.msra.gmra.mrb[8].mxu1 %vm526_vm2, %v880_v17 }
 0x44b   : > { %1751 = vmatmul.mubr.msk.f32.vlgmr.msra.gmra.mrb[6].mxu0 %vm526_vm2, %v879_v18  ;;  %1765 = vmatprep.mubr.msk.f32.mxu1 %vm2043_vm0, %v2044_v1 }
 0x44c   : > { %1759 = vmatpush3.msra.mxu0 %v1185_v19  ;;  %1760 = vmatprep.mubr.msk.f32.mxu0 %vm2043_vm0, %v2044_v1 }
 0x44d   : > { %1768 = vmatprep.subr.mxu0 %v2044_v1  ;;  %1764 = vmatpush3.msra.mxu1 %v1186_v20 }
 0x44e   : > { %1773 = vmatprep.subr.mxu1 %v2044_v1 }
 0x4b5   : > { %v953_v22 = vpop.f32.mrb[4].mxu0 }
 0x4b6   : > { %v1742_v23 = vpop.f32.mrb[5].mxu0  ;;  %1761 = vmatmul.mubr.msk.f32.vlgmr.msra.gmra.mrb[8].mxu0 %vm526_vm2, %v953_v22 }
 0x4b7   : > { %1769 = vmatpush3.msra.mxu0 %v1187_v21  ;;  %1770 = vmatprep.mubr.msk.f32.mxu0 %vm2043_vm0, %v2044_v1 }
 0x519   : > { %v1029_v25 = vpop.f32.mrb[6].mxu1 }
 0x51a   : > { %v1747_v26 = vpop.f32.mrb[7].mxu1  ;;  %1766 = vmatmul.mubr.msk.f32.vlgmr.msra.gmra.mrb[10].mxu1 %vm526_vm2, %v1029_v25 }
 0x51b   : > { %1774 = vmatpush3.msra.mxu1 %v1188_v24  ;;  %1775 = vmatprep.mubr.msk.f32.mxu1 %vm2043_vm0, %v2044_v1 }
 0x51d   : > { %v1181_v27 = vpop.f32.mrb[8].mxu1 }
 0x51e   : > { %v1105_v28 = vpop.f32.mrb[6].mxu0  ;;  %v1757_v29 = vpop.f32.mrb[9].mxu1  ;;  %1776 = vmatmul.mubr.msk.f32.vlgmr.msra.gmra.mrb[12].mxu1 %vm526_vm2, %v1181_v27 }
 0x51f   : > { %v1752_v30 = vpop.f32.mrb[7].mxu0  ;;  %1771 = vmatmul.mubr.msk.f32.vlgmr.msra.gmra.mrb[10].mxu0 %vm526_vm2, %v1105_v28 }
 0x589   : > { %v1258_v31 = vpop.f32.mrb[8].mxu0 }
 0x58a   : > { %v1762_v32 = vpop.f32.mrb[9].mxu0  ;;  %v1481_v34 = vsel %vm431_vm1, %v1258_v31, 0.0 }
 0x5ed   : > { %v1331_v33 = vpop.f32.mrb[10].mxu1 }
 0x5ee   : > { %v1482_v35 = vsel %vm431_vm1, %v1331_v33, 0.0  ;;  %v1767_v36 = vpop.f32.mrb[11].mxu1 }
 0x5ef   : > { %v1483_v37 = vadd.f32 %v1482_v35, %v1481_v34 }
 0x5f1   : > { %v1477_v38 = vpop.f32.mrb[12].mxu1 }
 0x5f2   : > { %v1404_v39 = vpop.f32.mrb[10].mxu0  ;;  %v1777_v1 = vpop.f32.mrb[13].mxu1  ;;  %v1486_v43 = vsel %vm431_vm1, %v1477_v38, 0.0 }
 0x5f3   : > { %v1484_v40 = vsel %vm431_vm1, %v1404_v39, 0.0  ;;  %v1772_v41 = vpop.f32.mrb[11].mxu0 }
 0x5f4   : > { %v1485_v42 = vadd.f32 %v1484_v40, %v1483_v37 }
 0x5f6   : > { %v1487_v45 = vadd.f32 %v1486_v43, %v1485_v42 }
 0x5f8   : > { %v1495_v46 = vadd.f32 %v1671_v44, %v1487_v45 }
 0x5fa   : > { %v1496_v47 = vadd.f32 %v1495_v46, %v2297_v8  ;;  %v1672_v8 = vld [vmem:[%s2463_s5] ss:$0 sm:$0xff] }
 0x5fc   : > { %v1497_v48 = vsel %vm431_vm1, %v1496_v47, 0.0 }
 0x5fd   : > { %1498 = vadd.xlane.f32.xlu1 %v1497_v48 }
 0x68a   : > { %v1499_v49 = vpop.xlane.xlu1 %1498 }
 0x68b   : > { %v1501_v50 = vmul.f32 0.03125, %v1499_v49 }
 0x68d   : > { %v1502_v51 = vsub.f32 %v1496_v47, %v1501_v50 }
 0x68f   : > { %v1503_v52 = vmul.f32 %v1502_v51, %v1502_v51 }
 0x691   : > { %v1504_v53 = vsel %vm431_vm1, %v1503_v52, 0.0 }
 0x692   : > { %1505 = vadd.xlane.f32.xlu0 %v1504_v53 }
 0x71f   : > { %v1506_v54 = vpop.xlane.xlu0 %1505 }
 0x720   : > { %v1507_v55 = vmul.f32 0.03125, %v1506_v54 }
 0x722   : > { %v1508_v56 = vadd.f32 1e-12, %v1507_v55 }
 0x724   : > { %1877 = vrsqrt.f32 %v1508_v56 }
 0x72e   : > { %v1878_v57 = vpop.eup %1877 }
 0x72f   : > { %v1510_v58 = vmul.f32 %v1878_v57, %v1502_v51 }
 0x731   : > { %v1518_v60 = vmul.f32 %v1672_v8, %v1510_v58 }
 0x733   : > { %v1526_v61 = vadd.f32 %v1673_v59, %v1518_v60 }
 0x735   : > { %1527 = vst.msk [vmem:[%s415_s13] sm:$0xff] %vm431_vm1, %v1526_v61 }
 0x736   : > { %1978 = shalt.err (!%p1975_p13)
}
 0x737   : > { %s1979_s30 = scalar_lea.hbm %s2413_s21, 128  ;;  %s1983_s24 = scalar_lea.hbm %s2468_s10, 256 }
 0x738   : > { %p1980_p6 = scmp.ne.s32.totalorder %s2413_s21, %s1979_s30  ;;  %p1984_p5 = scmp.lt.u32.totalorder %s2413_s21, %s2468_s10 }
 0x739   : > { %p1985_p8 = scmp.lt.u32.totalorder %s1983_s24, %s1979_s30  ;;  %p1987_p0 = scmp.lt.u32.totalorder %s1979_s30, %s2413_s21 }
 0x73a   : > { %p1981_p10 = pnand %p1980_p6, %p2484_p1 }
 0x73b   : > { %p1986_p11 = por %p1985_p8, %p1984_p5 }
 0x73c   : > { %p1982_p4 = pneg %p1981_p10 }
 0x73d   : > { %p1988_p3 = por %p1987_p0, %p1986_p11 }
 0x73f   : > { %p1989_p7 = pnand %p1988_p3, %p1982_p4 }
 0x741   : > { %1992 = shalt.err (!%p1989_p7)
}
 0x742   : > { %1794 = dma.vmem_to_hbm [thread:$0]  (%p2484_p1), %s2415_s20, 128, %s2413_s21, %s1529_s28  }
 0x743 PF: > { %s2485_s19 = sld [smem:[#allocation13_spill]]  ;;  %s1554_s25 = sand.u32 1, %s2023_s15  }
 0x744   : > { %p2487_p12 = scmp.ge.s32.totalorder %s2035_s18, 2  ;;  %s1555_s8 = scalar_lea.sflag [#allocation5], %s1554_s25 }
 0x749   : > { %p2486_p9 = scmp.ne.s32.totalorder %s2485_s19, 0 }
 0x74b   : > { %p1808_p2 = pnand %p2487_p12, %p2486_p9 }
 0x74d   : > { %2018 = dma.done.wait (!%p1808_p2), %s1555_s8, 128  }
 0x74e   : > { %2020 = vsyncadd (!%p1808_p2), %s1555_s8, 4294967168  ;;  %p25_p13 = scmp.ge.s32.totalorder %s2219_s29, 4   ;;  %s2488_s15 = smov %s2027_s16 }
 0x74f   : > { %s2489_s16 = smov %s2031_s17  ;;  %s2490_s17 = smov %s2235_s12 }
 0x750   : > { %s2491_s18 = smov %s2219_s29  ;;  %27 = sbr.rel (!%p25_p13) target bundleno = 8 (0x8), region = 116 }
 0x757   :  { %1560 = vsyncpa [#allocation4], 1 }
 0x758   :  { %1562 = vsyncpa [#allocation4 + $0x1], 1 }
 0x759   :  { %1563 = vsyncpa [#allocation7], 1 }
 0x75a   :  { %1564 = vsyncpa [#allocation5], 1 }
 0x75b   :  { %1566 = vsyncpa [#allocation5 + $0x1], 1 }

</bundles_post_ra>
